<compile_context>
chip_gen: v7x
topology: tpu7x:2x2x1
jax: 0.10.0
libtpu: 0.0.40
codegen_flags: <defaults>
</compile_context>

<pallas_src>
import functools

import jax
import jax.numpy as jnp
from jax import lax
from jax.experimental import pallas as pl
from jax.experimental.pallas import tpu as pltpu


def _round_up(x, m):
    return ((x + m - 1) // m) * m


def _seg_max_kernel(index_ref, values_ref, out_ref, acc_ref, seen_ref, *,
                    seg_block, chunk, acc_dtype, fill_value):
    """Grid step (di, si, ni): fold values tile `ni` x feature block `di`
    into the resident max accumulator of segment block `si`."""
    si = pl.program_id(1)
    ni = pl.program_id(2)
    tn, td = values_ref.shape
    num_chunks = tn // chunk
    n_sb = seg_block // 8

    @pl.when(ni == 0)
    def _init():
        acc_ref[...] = jnp.full(acc_ref.shape, fill_value, acc_ref.dtype)
        seen_ref[...] = jnp.zeros(seen_ref.shape, seen_ref.dtype)

    fill = jnp.array(fill_value, acc_dtype)
    seg0 = si * seg_block                       # first segment id of this block

    def _do_segment_block(sb_base):
        """Fold the whole values tile into segments [seg0+sb_base, seg0+sb_base+8)."""
        gbase = seg0 + sb_base                  # hoisted scalar (feedback: no per-iter adds)

        def chunk_body(c, carry):
            pmax, pseen = carry
            off = pl.multiple_of(c * chunk, chunk)
            v = values_ref[pl.ds(off, chunk), :].astype(acc_dtype)   # [chunk, TD]
            idx = index_ref[pl.ds(off, chunk), :]                    # [chunk, 1]
            new_pmax, new_pseen = [], []
            for t in range(8):                  # 8 segments reuse the live chunk vregs
                m = idx == (gbase + t)                               # [chunk, 1]
                new_pmax.append(jnp.maximum(pmax[t], jnp.where(m, v, fill)))
                new_pseen.append(jnp.maximum(pseen[t], m.astype(jnp.float32)))
            return tuple(new_pmax), tuple(new_pseen)

        init = (tuple(jnp.full((chunk, td), fill, acc_dtype) for _ in range(8)),
                tuple(jnp.zeros((chunk, 128), jnp.float32) for _ in range(8)))
        pmax, pseen = lax.fori_loop(0, num_chunks, chunk_body, init)

        # One sublane reduce per segment, then a single unmasked (8, TD) RMW.
        pmax_blk = jnp.concatenate(
            [jnp.max(p, axis=0, keepdims=True) for p in pmax], axis=0)    # [8, TD]
        seen_blk = jnp.concatenate(
            [jnp.max(p, axis=0, keepdims=True) for p in pseen], axis=0)   # [8, 128]
        acc_ref[pl.ds(sb_base, 8), :] = jnp.maximum(
            acc_ref[pl.ds(sb_base, 8), :], pmax_blk)
        seen_ref[pl.ds(sb_base, 8), :] = jnp.maximum(
            seen_ref[pl.ds(sb_base, 8), :], seen_blk)

    if n_sb <= 8:                               # small segment blocks: static unroll
        for sb in range(n_sb):
            _do_segment_block(sb * 8)
    else:
        def sb_body(sb, carry):
            _do_segment_block(pl.multiple_of(sb * 8, 8))
            return carry
        lax.fori_loop(0, n_sb, sb_body, 0)

    @pl.when(ni == pl.num_programs(2) - 1)
    def _finalize():
        res = acc_ref[...]
        seen = seen_ref[:, 0:1] > 0.0           # explicit flag -> no sentinel collision
        out_ref[...] = jnp.where(seen, res,
                                 jnp.zeros((), res.dtype)).astype(out_ref.dtype)


def max_aggregation_pallas(values, index, size, *, tile_rows=None, seg_block=None):
    """Segment max: out[s, d] = max_{n : index[n] == s} values[n, d], else 0.

    Rows whose index is outside [0, size) never contribute (dropped, not an error).
    """
    values = jnp.asarray(values)
    index = jnp.asarray(index, jnp.int32)
    N, D = values.shape
    itemsize = jnp.dtype(values.dtype).itemsize

    if jnp.issubdtype(values.dtype, jnp.floating):
        acc_dtype = jnp.float32                 # f32 accumulation (bf16 inputs, v5e)
        fill_value = float("-inf")
    else:
        acc_dtype = values.dtype                # exact integer max
        fill_value = int(jnp.iinfo(values.dtype).min)
    acc_itemsize = jnp.dtype(acc_dtype).itemsize

    # Lane-dense feature dimension: pad D to a multiple of 128 and split into
    # TD-lane blocks ("parallel" axis -> v7x cores read disjoint columns).
    d_pad = _round_up(D, 128)
    td = 256 if (d_pad % 256 == 0 and d_pad > 128) else 128
    num_d = d_pad // td

    # Rows are walked in vreg-sized chunks inside the kernel.
    chunk = 16 if td <= 128 else 8

    # Segment blocks: the (SEG_BLOCK, TD) accumulator is VMEM-resident, so the
    # values array is streamed from HBM once per SEG_BLOCK (<=4096) segments.
    s_pad = _round_up(max(int(size), 1), 8)
    if seg_block is None:
        sb = min(s_pad, 4096)
    else:
        sb = min(_round_up(int(seg_block), 8), s_pad)
    s_pad = _round_up(s_pad, sb)
    num_s = s_pad // sb

    # Values tile sized purely by bytes (~3 MiB incl. the lane-padded index tile).
    per_row_bytes = td * itemsize + 128 * 4
    tn = (3 * 1024 * 1024) // per_row_bytes if tile_rows is None else int(tile_rows)
    tn = max(chunk, (tn // chunk) * chunk)
    tn = min(tn, _round_up(N, chunk))
    n_pad = _round_up(N, tn)
    num_n = n_pad // tn

    if n_pad != N or d_pad != D:
        values = jnp.pad(values, ((0, n_pad - N), (0, d_pad - D)))
    if n_pad != N:
        index = jnp.pad(index, (0, n_pad - N), constant_values=-1)  # never matches
    index2d = index.reshape(n_pad, 1)

    vmem_needed = (2 * tn * td * itemsize       # values tile (double-buffered)
                   + 2 * tn * 128 * 4           # index tile (lane-padded, double-buffered)
                   + 2 * sb * td * itemsize     # output block
                   + sb * td * acc_itemsize     # max accumulator
                   + sb * 128 * 4)              # seen flags
    vmem_limit = int(min(32 * 1024 * 1024,      # <= v7x scoped default, safe on v5e/v6e
                         max(8 * 1024 * 1024, 2 * vmem_needed)))

    kernel = functools.partial(_seg_max_kernel, seg_block=sb, chunk=chunk,
                               acc_dtype=acc_dtype, fill_value=fill_value)
    out = pl.pallas_call(
        kernel,
        out_shape=jax.ShapeDtypeStruct((s_pad, d_pad), values.dtype),
        grid_spec=pltpu.PrefetchScalarGridSpec(
            num_scalar_prefetch=0,
            grid=(num_d, num_s, num_n),                               # reduction last
            in_specs=[
                pl.BlockSpec((tn, 1), lambda di, si, ni: (ni, 0)),    # index
                pl.BlockSpec((tn, td), lambda di, si, ni: (ni, di)),  # values
            ],
            out_specs=pl.BlockSpec((sb, td), lambda di, si, ni: (si, di)),
            scratch_shapes=[pltpu.VMEM((sb, td), acc_dtype),          # running max
                            pltpu.VMEM((sb, 128), jnp.float32)],      # seen flags
        ),
        compiler_params=pltpu.CompilerParams(
            dimension_semantics=("parallel", "arbitrary", "arbitrary"),
            vmem_limit_bytes=vmem_limit,
        ),
        cost_estimate=pl.CostEstimate(
            flops=int(3 * s_pad * n_pad * d_pad),
            transcendentals=0,
            bytes_accessed=int(num_s * n_pad * d_pad * itemsize
                               + num_s * num_d * n_pad * 4
                               + s_pad * d_pad * itemsize),
        ),
    )(index2d, values)
    return out[:size, :D]


class AggregationLayers:
    """JAX/Pallas port of itergnn AggregationLayers (Max variant)."""

    def __init__(self, layer_name="Max", key_dim=None, value_dim=None,
                 query_dim=None, embedding_layer_num=0, output_dim=None,
                 homogeneous_flag=False):
        assert "Attention" in layer_name or output_dim is None or output_dim == value_dim
        assert layer_name == "Max", "only MaxAggregation is implemented"
        # TODO(synk): Attention / other aggregation variants are not given in the
        # reference source; only the Max path is implemented here.
        self.layer_name = layer_name
        self.homogeneous_flag = homogeneous_flag
        self.value_dim = value_dim

    def forward(self, keys, values, query, index, size):
        if "Attention" in self.layer_name:
            raise NotImplementedError
        # Max path: keys / query are unused.
        return max_aggregation_pallas(values, index, size)

    __call__ = forward


if __name__ == "__main__":
    key = jax.random.PRNGKey(0)
    k_keys, k_vals, k_query, k_idx, k_vals2, k_idx2 = jax.random.split(key, 6)

    def ref_segment_max(v, idx, s):
        one_hot = idx[:, None] == jnp.arange(s)[None, :]
        masked = jnp.where(one_hot.T[:, :, None], v[None, :, :], -jnp.inf)
        r = jnp.max(masked, axis=1)
        return jnp.where(jnp.sum(one_hot, axis=0)[:, None] > 0, r, 0.0)

    # --- Test 1: module path (small dims, last segment left empty) ----------
    N, KEY_DIM, VALUE_DIM, QUERY_DIM, SIZE = 40, 16, 32, 16, 6
    keys_in = jax.random.normal(k_keys, (N, KEY_DIM), dtype=jnp.float32)
    values_in = jax.random.normal(k_vals, (N, VALUE_DIM), dtype=jnp.float32)
    query_in = jax.random.normal(k_query, (SIZE, QUERY_DIM), dtype=jnp.float32)
    index_in = jax.random.randint(k_idx, (N,), 0, SIZE - 1, dtype=jnp.int32)

    layer = AggregationLayers(layer_name="Max", key_dim=KEY_DIM, value_dim=VALUE_DIM,
                              query_dim=QUERY_DIM, embedding_layer_num=0,
                              output_dim=None, homogeneous_flag=False)
    out = jax.block_until_ready(layer(keys_in, values_in, query_in, index_in, SIZE))
    ref = ref_segment_max(values_in, index_in, SIZE)
    assert out.shape == (SIZE, VALUE_DIM)
    assert jnp.allclose(out, ref, atol=1e-6), "mismatch vs JAX reference"

    # --- Test 2: exercise multi values-tile / multi segment-block / multi
    #     feature-block paths (row padding, cross-tile accumulation) ----------
    N2, D2, SIZE2 = 40, 384, 21
    values2 = jax.random.normal(k_vals2, (N2, D2), dtype=jnp.float32)
    index2 = jax.random.randint(k_idx2, (N2,), 0, SIZE2 - 1, dtype=jnp.int32)
    out2 = jax.block_until_ready(
        max_aggregation_pallas(values2, index2, SIZE2, tile_rows=16, seg_block=8))
    ref2 = ref_segment_max(values2, index2, SIZE2)
    assert out2.shape == (SIZE2, D2)
    assert jnp.allclose(out2, ref2, atol=1e-6), "mismatch vs JAX reference (tiled)"

    print("KERNEL_OK")
</pallas_src>

<mosaic_0001>
module attributes {stable_mosaic.version = 11 : i64} {
  func.func @_seg_max_kernel(%arg0: i32, %arg1: i32, %arg2: i32, %arg3: memref<48x1xi32, #tpu.memory_space<vmem>>, %arg4: memref<48x128xf32, #tpu.memory_space<vmem>>, %arg5: memref<8x128xf32, #tpu.memory_space<vmem>>, %arg6: memref<8x128xf32, #tpu.memory_space<vmem>>, %arg7: memref<8x128xf32, #tpu.memory_space<vmem>>) attributes {dimension_semantics = [#tpu.dimension_semantics<parallel>, #tpu.dimension_semantics<arbitrary>, #tpu.dimension_semantics<arbitrary>], iteration_bounds = array<i64: 1, 1, 1>, scalar_prefetch = 0 : i64, scratch_operands = 2 : i64, tpu.core_type = #tpu.core_type<tc>, window_params = [{transform_indices = @transform_0, window_bounds = array<i64: 48, 1>}, {transform_indices = @transform_1, window_bounds = array<i64: 48, 128>}, {transform_indices = @transform_2, window_bounds = array<i64: 8, 128>}]} {
    %c0_i32 = arith.constant 0 : i32
    %0 = arith.cmpi eq, %arg2, %c0_i32 : i32
    %1 = arith.extui %0 : i1 to i32
    %c0_i32_0 = arith.constant 0 : i32
    %2 = arith.cmpi ne, %1, %c0_i32_0 : i32
    scf.if %2 {
      %cst_45 = arith.constant 0xFF800000 : f32
      %66 = vector.broadcast %cst_45 : f32 to vector<8x128xf32>
      %c0_46 = arith.constant 0 : index
      %c0_47 = arith.constant 0 : index
      %67 = vector.load %arg6[%c0_46, %c0_47] : memref<8x128xf32, #tpu.memory_space<vmem>>, vector<8x128xf32>
      tpu.vector_store %arg6[%c0_46, %c0_47], %66 {strides = array<i32>} : memref<8x128xf32, #tpu.memory_space<vmem>>, vector<8x128xf32>,
      %cst_48 = arith.constant 0.000000e+00 : f32
      %68 = vector.broadcast %cst_48 : f32 to vector<8x128xf32>
      %c0_49 = arith.constant 0 : index
      %c0_50 = arith.constant 0 : index
      %69 = vector.load %arg7[%c0_49, %c0_50] : memref<8x128xf32, #tpu.memory_space<vmem>>, vector<8x128xf32>
      tpu.vector_store %arg7[%c0_49, %c0_50], %68 {strides = array<i32>} : memref<8x128xf32, #tpu.memory_space<vmem>>, vector<8x128xf32>,
    } else {
    }
    %c8_i32 = arith.constant 8 : i32
    %3 = arith.muli %arg1, %c8_i32 : i32
    %c0_i32_1 = arith.constant 0 : i32
    %4 = arith.addi %3, %c0_i32_1 : i32
    %cst = arith.constant 0xFF800000 : f32
    %5 = vector.broadcast %cst : f32 to vector<16x128xf32>
    %cst_2 = arith.constant 0xFF800000 : f32
    %6 = vector.broadcast %cst_2 : f32 to vector<16x128xf32>
    %cst_3 = arith.constant 0xFF800000 : f32
    %7 = vector.broadcast %cst_3 : f32 to vector<16x128xf32>
    %cst_4 = arith.constant 0xFF800000 : f32
    %8 = vector.broadcast %cst_4 : f32 to vector<16x128xf32>
    %cst_5 = arith.constant 0xFF800000 : f32
    %9 = vector.broadcast %cst_5 : f32 to vector<16x128xf32>
    %cst_6 = arith.constant 0xFF800000 : f32
    %10 = vector.broadcast %cst_6 : f32 to vector<16x128xf32>
    %cst_7 = arith.constant 0xFF800000 : f32
    %11 = vector.broadcast %cst_7 : f32 to vector<16x128xf32>
    %cst_8 = arith.constant 0xFF800000 : f32
    %12 = vector.broadcast %cst_8 : f32 to vector<16x128xf32>
    %cst_9 = arith.constant 0.000000e+00 : f32
    %13 = vector.broadcast %cst_9 : f32 to vector<16x128xf32>
    %cst_10 = arith.constant 0.000000e+00 : f32
    %14 = vector.broadcast %cst_10 : f32 to vector<16x128xf32>
    %cst_11 = arith.constant 0.000000e+00 : f32
    %15 = vector.broadcast %cst_11 : f32 to vector<16x128xf32>
    %cst_12 = arith.constant 0.000000e+00 : f32
    %16 = vector.broadcast %cst_12 : f32 to vector<16x128xf32>
    %cst_13 = arith.constant 0.000000e+00 : f32
    %17 = vector.broadcast %cst_13 : f32 to vector<16x128xf32>
    %cst_14 = arith.constant 0.000000e+00 : f32
    %18 = vector.broadcast %cst_14 : f32 to vector<16x128xf32>
    %cst_15 = arith.constant 0.000000e+00 : f32
    %19 = vector.broadcast %cst_15 : f32 to vector<16x128xf32>
    %cst_16 = arith.constant 0.000000e+00 : f32
    %20 = vector.broadcast %cst_16 : f32 to vector<16x128xf32>
    %cst_17 = arith.constant 0xFF800000 : f32
    %c0_i32_18 = arith.constant 0 : i32
    %c3_i32 = arith.constant 3 : i32
    %21 = arith.addi %c0_i32_18, %c3_i32 : i32
    %c1_i32 = arith.constant 1 : i32
    %22:16 = scf.for %arg8 = %c0_i32_18 to %21 step %c1_i32 iter_args(%arg9 = %5, %arg10 = %6, %arg11 = %7, %arg12 = %8, %arg13 = %9, %arg14 = %10, %arg15 = %11, %arg16 = %12, %arg17 = %13, %arg18 = %14, %arg19 = %15, %arg20 = %16, %arg21 = %17, %arg22 = %18, %arg23 = %19, %arg24 = %20) -> (vector<16x128xf32>, vector<16x128xf32>, vector<16x128xf32>, vector<16x128xf32>, vector<16x128xf32>, vector<16x128xf32>, vector<16x128xf32>, vector<16x128xf32>, vector<16x128xf32>, vector<16x128xf32>, vector<16x128xf32>, vector<16x128xf32>, vector<16x128xf32>, vector<16x128xf32>, vector<16x128xf32>, vector<16x128xf32>)  : i32 {
      %c16_i32 = arith.constant 16 : i32
      %66 = arith.muli %arg8, %c16_i32 : i32
      %67 = tpu.assume_multiple %66, 16 : i32
      %68 = arith.index_cast %67 : i32 to index
      %c0_45 = arith.constant 0 : index
      %69 = vector.load %arg4[%68, %c0_45] : memref<48x128xf32, #tpu.memory_space<vmem>>, vector<16x128xf32>
      %70 = arith.index_cast %67 : i32 to index
      %c0_46 = arith.constant 0 : index
      %71 = vector.load %arg3[%70, %c0_46] : memref<48x1xi32, #tpu.memory_space<vmem>>, vector<16x1xi32>
      %c0_i32_47 = arith.constant 0 : i32
      %72 = arith.addi %4, %c0_i32_47 : i32
      %73 = vector.broadcast %72 : i32 to vector<16x1xi32>
      %74 = arith.cmpi eq, %71, %73 : vector<16x1xi32>
      %75 = vector.shape_cast %74 : vector<16x1xi1> to vector<16x1xi1>
      %76 = vector.broadcast %75 : vector<16x1xi1> to vector<16x128xi1>
      %77 = vector.broadcast %cst_17 : f32 to vector<16x128xf32>
      %78 = arith.select %76, %69, %77 : vector<16x128xi1>, vector<16x128xf32>
      %79 = arith.maximumf %arg9, %78 : vector<16x128xf32>
      %80 = arith.extui %74 : vector<16x1xi1> to vector<16x1xi32>
      %81 = arith.sitofp %80 : vector<16x1xi32> to vector<16x1xf32>
      %82 = vector.broadcast %81 : vector<16x1xf32> to vector<16x128xf32>
      %83 = arith.maximumf %arg17, %82 : vector<16x128xf32>
      %c1_i32_48 = arith.constant 1 : i32
      %84 = arith.addi %4, %c1_i32_48 : i32
      %85 = vector.broadcast %84 : i32 to vector<16x1xi32>
      %86 = arith.cmpi eq, %71, %85 : vector<16x1xi32>
      %87 = vector.shape_cast %86 : vector<16x1xi1> to vector<16x1xi1>
      %88 = vector.broadcast %87 : vector<16x1xi1> to vector<16x128xi1>
      %89 = vector.broadcast %cst_17 : f32 to vector<16x128xf32>
      %90 = arith.select %88, %69, %89 : vector<16x128xi1>, vector<16x128xf32>
      %91 = arith.maximumf %arg10, %90 : vector<16x128xf32>
      %92 = arith.extui %86 : vector<16x1xi1> to vector<16x1xi32>
      %93 = arith.sitofp %92 : vector<16x1xi32> to vector<16x1xf32>
      %94 = vector.broadcast %93 : vector<16x1xf32> to vector<16x128xf32>
      %95 = arith.maximumf %arg18, %94 : vector<16x128xf32>
      %c2_i32 = arith.constant 2 : i32
      %96 = arith.addi %4, %c2_i32 : i32
      %97 = vector.broadcast %96 : i32 to vector<16x1xi32>
      %98 = arith.cmpi eq, %71, %97 : vector<16x1xi32>
      %99 = vector.shape_cast %98 : vector<16x1xi1> to vector<16x1xi1>
      %100 = vector.broadcast %99 : vector<16x1xi1> to vector<16x128xi1>
      %101 = vector.broadcast %cst_17 : f32 to vector<16x128xf32>
      %102 = arith.select %100, %69, %101 : vector<16x128xi1>, vector<16x128xf32>
      %103 = arith.maximumf %arg11, %102 : vector<16x128xf32>
      %104 = arith.extui %98 : vector<16x1xi1> to vector<16x1xi32>
      %105 = arith.sitofp %104 : vector<16x1xi32> to vector<16x1xf32>
      %106 = vector.broadcast %105 : vector<16x1xf32> to vector<16x128xf32>
      %107 = arith.maximumf %arg19, %106 : vector<16x128xf32>
      %c3_i32_49 = arith.constant 3 : i32
      %108 = arith.addi %4, %c3_i32_49 : i32
      %109 = vector.broadcast %108 : i32 to vector<16x1xi32>
      %110 = arith.cmpi eq, %71, %109 : vector<16x1xi32>
      %111 = vector.shape_cast %110 : vector<16x1xi1> to vector<16x1xi1>
      %112 = vector.broadcast %111 : vector<16x1xi1> to vector<16x128xi1>
      %113 = vector.broadcast %cst_17 : f32 to vector<16x128xf32>
      %114 = arith.select %112, %69, %113 : vector<16x128xi1>, vector<16x128xf32>
      %115 = arith.maximumf %arg12, %114 : vector<16x128xf32>
      %116 = arith.extui %110 : vector<16x1xi1> to vector<16x1xi32>
      %117 = arith.sitofp %116 : vector<16x1xi32> to vector<16x1xf32>
      %118 = vector.broadcast %117 : vector<16x1xf32> to vector<16x128xf32>
      %119 = arith.maximumf %arg20, %118 : vector<16x128xf32>
      %c4_i32 = arith.constant 4 : i32
      %120 = arith.addi %4, %c4_i32 : i32
      %121 = vector.broadcast %120 : i32 to vector<16x1xi32>
      %122 = arith.cmpi eq, %71, %121 : vector<16x1xi32>
      %123 = vector.shape_cast %122 : vector<16x1xi1> to vector<16x1xi1>
      %124 = vector.broadcast %123 : vector<16x1xi1> to vector<16x128xi1>
      %125 = vector.broadcast %cst_17 : f32 to vector<16x128xf32>
      %126 = arith.select %124, %69, %125 : vector<16x128xi1>, vector<16x128xf32>
      %127 = arith.maximumf %arg13, %126 : vector<16x128xf32>
      %128 = arith.extui %122 : vector<16x1xi1> to vector<16x1xi32>
      %129 = arith.sitofp %128 : vector<16x1xi32> to vector<16x1xf32>
      %130 = vector.broadcast %129 : vector<16x1xf32> to vector<16x128xf32>
      %131 = arith.maximumf %arg21, %130 : vector<16x128xf32>
      %c5_i32 = arith.constant 5 : i32
      %132 = arith.addi %4, %c5_i32 : i32
      %133 = vector.broadcast %132 : i32 to vector<16x1xi32>
      %134 = arith.cmpi eq, %71, %133 : vector<16x1xi32>
      %135 = vector.shape_cast %134 : vector<16x1xi1> to vector<16x1xi1>
      %136 = vector.broadcast %135 : vector<16x1xi1> to vector<16x128xi1>
      %137 = vector.broadcast %cst_17 : f32 to vector<16x128xf32>
      %138 = arith.select %136, %69, %137 : vector<16x128xi1>, vector<16x128xf32>
      %139 = arith.maximumf %arg14, %138 : vector<16x128xf32>
      %140 = arith.extui %134 : vector<16x1xi1> to vector<16x1xi32>
      %141 = arith.sitofp %140 : vector<16x1xi32> to vector<16x1xf32>
      %142 = vector.broadcast %141 : vector<16x1xf32> to vector<16x128xf32>
      %143 = arith.maximumf %arg22, %142 : vector<16x128xf32>
      %c6_i32 = arith.constant 6 : i32
      %144 = arith.addi %4, %c6_i32 : i32
      %145 = vector.broadcast %144 : i32 to vector<16x1xi32>
      %146 = arith.cmpi eq, %71, %145 : vector<16x1xi32>
      %147 = vector.shape_cast %146 : vector<16x1xi1> to vector<16x1xi1>
      %148 = vector.broadcast %147 : vector<16x1xi1> to vector<16x128xi1>
      %149 = vector.broadcast %cst_17 : f32 to vector<16x128xf32>
      %150 = arith.select %148, %69, %149 : vector<16x128xi1>, vector<16x128xf32>
      %151 = arith.maximumf %arg15, %150 : vector<16x128xf32>
      %152 = arith.extui %146 : vector<16x1xi1> to vector<16x1xi32>
      %153 = arith.sitofp %152 : vector<16x1xi32> to vector<16x1xf32>
      %154 = vector.broadcast %153 : vector<16x1xf32> to vector<16x128xf32>
      %155 = arith.maximumf %arg23, %154 : vector<16x128xf32>
      %c7_i32 = arith.constant 7 : i32
      %156 = arith.addi %4, %c7_i32 : i32
      %157 = vector.broadcast %156 : i32 to vector<16x1xi32>
      %158 = arith.cmpi eq, %71, %157 : vector<16x1xi32>
      %159 = vector.shape_cast %158 : vector<16x1xi1> to vector<16x1xi1>
      %160 = vector.broadcast %159 : vector<16x1xi1> to vector<16x128xi1>
      %161 = vector.broadcast %cst_17 : f32 to vector<16x128xf32>
      %162 = arith.select %160, %69, %161 : vector<16x128xi1>, vector<16x128xf32>
      %163 = arith.maximumf %arg16, %162 : vector<16x128xf32>
      %164 = arith.extui %158 : vector<16x1xi1> to vector<16x1xi32>
      %165 = arith.sitofp %164 : vector<16x1xi32> to vector<16x1xf32>
      %166 = vector.broadcast %165 : vector<16x1xf32> to vector<16x128xf32>
      %167 = arith.maximumf %arg24, %166 : vector<16x128xf32>
      scf.yield %79, %91, %103, %115, %127, %139, %151, %163, %83, %95, %107, %119, %131, %143, %155, %167 : vector<16x128xf32>, vector<16x128xf32>, vector<16x128xf32>, vector<16x128xf32>, vector<16x128xf32>, vector<16x128xf32>, vector<16x128xf32>, vector<16x128xf32>, vector<16x128xf32>, vector<16x128xf32>, vector<16x128xf32>, vector<16x128xf32>, vector<16x128xf32>, vector<16x128xf32>, vector<16x128xf32>, vector<16x128xf32>
    }
    %c3_i32_19 = arith.constant 3 : i32
    %cst_20 = arith.constant dense<0xFF800000> : vector<128xf32>
    %23 = vector.multi_reduction <maximumf>, %22#0, %cst_20 [0] : vector<16x128xf32> to vector<128xf32>
    %24 = vector.shape_cast %23 : vector<128xf32> to vector<1x128xf32>
    %cst_21 = arith.constant dense<0xFF800000> : vector<128xf32>
    %25 = vector.multi_reduction <maximumf>, %22#1, %cst_21 [0] : vector<16x128xf32> to vector<128xf32>
    %26 = vector.shape_cast %25 : vector<128xf32> to vector<1x128xf32>
    %cst_22 = arith.constant dense<0xFF800000> : vector<128xf32>
    %27 = vector.multi_reduction <maximumf>, %22#2, %cst_22 [0] : vector<16x128xf32> to vector<128xf32>
    %28 = vector.shape_cast %27 : vector<128xf32> to vector<1x128xf32>
    %cst_23 = arith.constant dense<0xFF800000> : vector<128xf32>
    %29 = vector.multi_reduction <maximumf>, %22#3, %cst_23 [0] : vector<16x128xf32> to vector<128xf32>
    %30 = vector.shape_cast %29 : vector<128xf32> to vector<1x128xf32>
    %cst_24 = arith.constant dense<0xFF800000> : vector<128xf32>
    %31 = vector.multi_reduction <maximumf>, %22#4, %cst_24 [0] : vector<16x128xf32> to vector<128xf32>
    %32 = vector.shape_cast %31 : vector<128xf32> to vector<1x128xf32>
    %cst_25 = arith.constant dense<0xFF800000> : vector<128xf32>
    %33 = vector.multi_reduction <maximumf>, %22#5, %cst_25 [0] : vector<16x128xf32> to vector<128xf32>
    %34 = vector.shape_cast %33 : vector<128xf32> to vector<1x128xf32>
    %cst_26 = arith.constant dense<0xFF800000> : vector<128xf32>
    %35 = vector.multi_reduction <maximumf>, %22#6, %cst_26 [0] : vector<16x128xf32> to vector<128xf32>
    %36 = vector.shape_cast %35 : vector<128xf32> to vector<1x128xf32>
    %cst_27 = arith.constant dense<0xFF800000> : vector<128xf32>
    %37 = vector.multi_reduction <maximumf>, %22#7, %cst_27 [0] : vector<16x128xf32> to vector<128xf32>
    %38 = vector.shape_cast %37 : vector<128xf32> to vector<1x128xf32>
    %39 = tpu.concatenate %24, %26, %28, %30, %32, %34, %36, %38 in 0 : vector<1x128xf32>, vector<1x128xf32>, vector<1x128xf32>, vector<1x128xf32>, vector<1x128xf32>, vector<1x128xf32>, vector<1x128xf32>, vector<1x128xf32> -> vector<8x128xf32>
    %cst_28 = arith.constant dense<0xFF800000> : vector<128xf32>
    %40 = vector.multi_reduction <maximumf>, %22#8, %cst_28 [0] : vector<16x128xf32> to vector<128xf32>
    %41 = vector.shape_cast %40 : vector<128xf32> to vector<1x128xf32>
    %cst_29 = arith.constant dense<0xFF800000> : vector<128xf32>
    %42 = vector.multi_reduction <maximumf>, %22#9, %cst_29 [0] : vector<16x128xf32> to vector<128xf32>
    %43 = vector.shape_cast %42 : vector<128xf32> to vector<1x128xf32>
    %cst_30 = arith.constant dense<0xFF800000> : vector<128xf32>
    %44 = vector.multi_reduction <maximumf>, %22#10, %cst_30 [0] : vector<16x128xf32> to vector<128xf32>
    %45 = vector.shape_cast %44 : vector<128xf32> to vector<1x128xf32>
    %cst_31 = arith.constant dense<0xFF800000> : vector<128xf32>
    %46 = vector.multi_reduction <maximumf>, %22#11, %cst_31 [0] : vector<16x128xf32> to vector<128xf32>
    %47 = vector.shape_cast %46 : vector<128xf32> to vector<1x128xf32>
    %cst_32 = arith.constant dense<0xFF800000> : vector<128xf32>
    %48 = vector.multi_reduction <maximumf>, %22#12, %cst_32 [0] : vector<16x128xf32> to vector<128xf32>
    %49 = vector.shape_cast %48 : vector<128xf32> to vector<1x128xf32>
    %cst_33 = arith.constant dense<0xFF800000> : vector<128xf32>
    %50 = vector.multi_reduction <maximumf>, %22#13, %cst_33 [0] : vector<16x128xf32> to vector<128xf32>
    %51 = vector.shape_cast %50 : vector<128xf32> to vector<1x128xf32>
    %cst_34 = arith.constant dense<0xFF800000> : vector<128xf32>
    %52 = vector.multi_reduction <maximumf>, %22#14, %cst_34 [0] : vector<16x128xf32> to vector<128xf32>
    %53 = vector.shape_cast %52 : vector<128xf32> to vector<1x128xf32>
    %cst_35 = arith.constant dense<0xFF800000> : vector<128xf32>
    %54 = vector.multi_reduction <maximumf>, %22#15, %cst_35 [0] : vector<16x128xf32> to vector<128xf32>
    %55 = vector.shape_cast %54 : vector<128xf32> to vector<1x128xf32>
    %56 = tpu.concatenate %41, %43, %45, %47, %49, %51, %53, %55 in 0 : vector<1x128xf32>, vector<1x128xf32>, vector<1x128xf32>, vector<1x128xf32>, vector<1x128xf32>, vector<1x128xf32>, vector<1x128xf32>, vector<1x128xf32> -> vector<8x128xf32>
    %c0 = arith.constant 0 : index
    %c0_36 = arith.constant 0 : index
    %57 = vector.load %arg6[%c0, %c0_36] : memref<8x128xf32, #tpu.memory_space<vmem>>, vector<8x128xf32>
    %58 = arith.maximumf %57, %39 : vector<8x128xf32>
    %c0_37 = arith.constant 0 : index
    %c0_38 = arith.constant 0 : index
    %59 = vector.load %arg6[%c0_37, %c0_38] : memref<8x128xf32, #tpu.memory_space<vmem>>, vector<8x128xf32>
    tpu.vector_store %arg6[%c0_37, %c0_38], %58 {strides = array<i32>} : memref<8x128xf32, #tpu.memory_space<vmem>>, vector<8x128xf32>,
    %c0_39 = arith.constant 0 : index
    %c0_40 = arith.constant 0 : index
    %60 = vector.load %arg7[%c0_39, %c0_40] : memref<8x128xf32, #tpu.memory_space<vmem>>, vector<8x128xf32>
    %61 = arith.maximumf %60, %56 : vector<8x128xf32>
    %c0_41 = arith.constant 0 : index
    %c0_42 = arith.constant 0 : index
    %62 = vector.load %arg7[%c0_41, %c0_42] : memref<8x128xf32, #tpu.memory_space<vmem>>, vector<8x128xf32>
    tpu.vector_store %arg7[%c0_41, %c0_42], %61 {strides = array<i32>} : memref<8x128xf32, #tpu.memory_space<vmem>>, vector<8x128xf32>,
    %c0_i32_43 = arith.constant 0 : i32
    %63 = arith.cmpi eq, %arg2, %c0_i32_43 : i32
    %64 = arith.extui %63 : i1 to i32
    %c0_i32_44 = arith.constant 0 : i32
    %65 = arith.cmpi ne, %64, %c0_i32_44 : i32
    scf.if %65 {
      %c0_45 = arith.constant 0 : index
      %c0_46 = arith.constant 0 : index
      %66 = vector.load %arg6[%c0_45, %c0_46] : memref<8x128xf32, #tpu.memory_space<vmem>>, vector<8x128xf32>
      %c0_47 = arith.constant 0 : index
      %c0_48 = arith.constant 0 : index
      %67 = vector.load %arg7[%c0_47, %c0_48] : memref<8x128xf32, #tpu.memory_space<vmem>>, vector<8x1xf32>
      %cst_49 = arith.constant 0.000000e+00 : f32
      %68 = vector.broadcast %cst_49 : f32 to vector<8x1xf32>
      %69 = arith.cmpf ogt, %67, %68 : vector<8x1xf32>
      %cst_50 = arith.constant 0.000000e+00 : f32
      %70 = vector.shape_cast %69 : vector<8x1xi1> to vector<8x1xi1>
      %71 = vector.broadcast %70 : vector<8x1xi1> to vector<8x128xi1>
      %72 = vector.broadcast %cst_50 : f32 to vector<8x128xf32>
      %73 = arith.select %71, %66, %72 : vector<8x128xi1>, vector<8x128xf32>
      %c0_51 = arith.constant 0 : index
      %c0_52 = arith.constant 0 : index
      %74 = vector.load %arg5[%c0_51, %c0_52] : memref<8x128xf32, #tpu.memory_space<vmem>>, vector<8x128xf32>
      tpu.vector_store %arg5[%c0_51, %c0_52], %73 {strides = array<i32>} : memref<8x128xf32, #tpu.memory_space<vmem>>, vector<8x128xf32>,
    } else {
    }
    return
  }
  func.func @transform_0(%arg0: i32, %arg1: i32, %arg2: i32) -> (i32, i32) {
    %c0_i32 = arith.constant 0 : i32
    %c0_i32_0 = arith.constant 0 : i32
    return %arg2, %c0_i32 : i32, i32
  }
  func.func @transform_1(%arg0: i32, %arg1: i32, %arg2: i32) -> (i32, i32) {
    %c0_i32 = arith.constant 0 : i32
    return %arg2, %arg0 : i32, i32
  }
  func.func @transform_2(%arg0: i32, %arg1: i32, %arg2: i32) -> (i32, i32) {
    %c0_i32 = arith.constant 0 : i32
    return %arg1, %arg0 : i32, i32
  }
}

</mosaic_0001>

<bundles_post_ra>
// kernel: tpu_custom_call.1
= control target key start
LH: loop header
LB: loop body
LE: loop exit
PB: predicated region body
PF: predicated region fallthrough
CT: control target
= control target key end

     0   :  { %7 = vsyncpa [#allocation5], 0  ;;  %v1208_v0 = vmov -inf   ;;  %v1209_v1 = vmov 0.0   ;;  %v1229_v2 = vmov 0.0   ;;  %v1231_v3 = vmov 0.0   ;;  %s1740_s0 = inlined_call_operand.vmem [shape: s32[48,1], index: 0, kind: input, shape index: {}]   ;;  %s1741_s1 = inlined_call_operand.vmem [shape: f32[48,128], index: 1, kind: input, shape index: {}]   ;;  %s1742_s2 = inlined_call_operand.hbm [shape: f32[8,128], index: 2, kind: output, shape index: {}]  }
   0x1   :  { %16 = vst [vmem:[#allocation2] sm:$0xff] %v1208_v0  ;;  %17 = vst [vmem:[#allocation3] sm:$0xff] %v1209_v1  ;;  %v1233_v4 = vmov 0.0   ;;  %v1235_v5 = vmov 0.0   ;;  %v1237_v6 = vmov 0.0   ;;  %v1239_v7 = vmov 0.0  }
   0x2   :  { %v1241_v8 = vmov 0.0   ;;  %v1243_v9 = vmov 0.0   ;;  %v1245_v10 = vmov 0.0   ;;  %v1247_v11 = vmov 0.0   ;;  %s1293_s9 = smov 0  }
   0x3   :  { %v1249_v12 = vmov 0.0   ;;  %v1251_v13 = vmov 0.0   ;;  %v1253_v14 = vmov 0.0   ;;  %v1255_v15 = vmov 0.0  }
   0x4   :  { %v1257_v16 = vmov 0.0   ;;  %v1259_v17 = vmov 0.0   ;;  %v1261_v18 = vmov -inf   ;;  %v1263_v19 = vmov -inf  }
   0x5   :  { %v1265_v20 = vmov -inf   ;;  %v1267_v21 = vmov -inf   ;;  %v1269_v22 = vmov -inf   ;;  %v1271_v23 = vmov -inf  }
   0x6   :  { %v1273_v24 = vmov -inf   ;;  %v1275_v25 = vmov -inf   ;;  %v1277_v26 = vmov -inf   ;;  %v1279_v27 = vmov -inf  }
   0x7   :  { %v1281_v28 = vmov -inf   ;;  %v1283_v29 = vmov -inf   ;;  %v1285_v30 = vmov -inf   ;;  %v1287_v31 = vmov -inf  }
   0x8   :  { %v1289_v32 = vmov -inf   ;;  %v1291_v33 = vmov -inf  }
   0x9 LB: > { %v1210_v34 = vmov 0   ;;  %s590_s10 = sshll.u32 %s1206_s9, 4  ;;  %v1211_v38 = vmov 0.0   ;;  %s24_s17 = sadd.s32 1, %s1206_s9   ;;  %s1206_s9 = sphi %s1293_s9, %s1812_s9   ;;  %v1202_v33 = vphi %v1291_v33, %v1811_v33   ;;  %v1198_v32 = vphi %v1289_v32, %v1810_v32   ;;  %v1194_v31 = vphi %v1287_v31, %v1809_v31   ;;  %v1190_v30 = vphi %v1285_v30, %v1808_v30   ;;  %v1186_v29 = vphi %v1283_v29, %v1807_v29   ;;  %v1182_v28 = vphi %v1281_v28, %v1806_v28   ;;  %v1178_v27 = vphi %v1279_v27, %v1805_v27   ;;  %v1174_v26 = vphi %v1277_v26, %v1804_v26   ;;  %v1170_v25 = vphi %v1275_v25, %v1803_v25   ;;  %v1166_v24 = vphi %v1273_v24, %v1802_v24   ;;  %v1162_v23 = vphi %v1271_v23, %v1801_v23   ;;  %v1158_v22 = vphi %v1269_v22, %v1800_v22   ;;  %v1154_v21 = vphi %v1267_v21, %v1799_v21   ;;  %v1150_v20 = vphi %v1265_v20, %v1798_v20   ;;  %v1146_v19 = vphi %v1263_v19, %v1797_v19   ;;  %v1142_v18 = vphi %v1261_v18, %v1796_v18   ;;  %v1138_v17 = vphi %v1259_v17, %v1795_v17   ;;  %v1134_v16 = vphi %v1257_v16, %v1794_v16   ;;  %v1130_v15 = vphi %v1255_v15, %v1793_v15   ;;  %v1126_v14 = vphi %v1253_v14, %v1792_v14   ;;  %v1122_v13 = vphi %v1251_v13, %v1791_v13   ;;  %v1118_v12 = vphi %v1249_v12, %v1790_v12   ;;  %v1114_v11 = vphi %v1247_v11, %v1789_v11   ;;  %v1110_v10 = vphi %v1245_v10, %v1788_v10   ;;  %v1106_v9 = vphi %v1243_v9, %v1787_v9   ;;  %v1102_v8 = vphi %v1241_v8, %v1786_v8   ;;  %v1098_v7 = vphi %v1239_v7, %v1785_v7   ;;  %v1094_v6 = vphi %v1237_v6, %v1784_v6   ;;  %v1090_v5 = vphi %v1235_v5, %v1783_v5   ;;  %v1086_v4 = vphi %v1233_v4, %v1782_v4   ;;  %v1082_v3 = vphi %v1231_v3, %v1781_v3   ;;  %v1078_v2 = vphi %v1229_v2, %v1780_v2  }
   0xa   : > { %877 = vset.pattern.permute.xlu0 %v1210_v34  ;;  %878 = vset.pattern.permute.xlu1 %v1210_v34  ;;  %s61_s13 = scalar_lea.vmem %s1740_s0, %s590_s10  ;;  %s58_s16 = scalar_lea.vmem %s1741_s1, %s590_s10 }
   0xb   : > { %v1402_v35 = vld [vmem:[%s61_s13] sm:$0xff]  ;;  %v1404_v36 = vld [vmem:[%s61_s13 + $0x8] sm:$0xff]  ;;  %p1590_p0 = scmp.ge.s32.totalorder %s24_s17, 3   ;;  %s1812_s9 = smov %s24_s17 }
   0xc   : > { %vm65_vm0 = vcmp.eq.s32.totalorder %v1402_v35, 0  ;;  %vm66_vm1 = vcmp.eq.s32.totalorder %v1404_v36, 0  ;;  %vm97_vm2 = vcmp.eq.s32.totalorder %v1402_v35, 1  ;;  %vm98_vm3 = vcmp.eq.s32.totalorder %v1404_v36, 1  ;;  %s1213_s0 = smov (%p1590_p0), [#allocation4]  }
   0xd   : > { %v67_v37 = vsel %vm65_vm0, 1, %v1210_v34  ;;  %v591_v39 = vsel %vm65_vm0, 1.0, %v1211_v38  ;;  %v592_v40 = vsel %vm66_vm1, 1.0, %v1211_v38  ;;  %v68_v42 = vsel %vm66_vm1, 1, %v1210_v34  ;;  %s477_s1 = sshll.u32 (%p1590_p0), %s1213_s0, 4  ;;  %s478_s1 = int_to_ptr.vmem [resolvable:$true] %s477_s1 }
   0xe   : > { %70 = vperm.xlu0 %877, %v67_v37   ;;  %v879_v41 = vpack.i.bf16 %v592_v40, %v591_v39  ;;  %v99_v43 = vsel %vm97_vm2, 1, %v1210_v34  ;;  %v593_v44 = vsel %vm97_vm2, 1.0, %v1211_v38  ;;  %v594_v45 = vsel %vm98_vm3, 1.0, %v1211_v38  ;;  %s920_s19 = scalar_lea.vmem (%p1590_p0), %s478_s1, 128  ;;  %p925_p2 = scmp.lt.s32.totalorder (%p1590_p0), %s478_s1, %s478_s1 }
   0xf   : > { %v100_v46 = vsel %vm98_vm3, 1, %v1210_v34  ;;  %v884_v47 = vpack.i.bf16 %v594_v45, %v593_v44  ;;  %vm129_vm4 = vcmp.eq.s32.totalorder %v1402_v35, 2  ;;  %vm130_vm5 = vcmp.eq.s32.totalorder %v1404_v36, 2  ;;  %p921_p1 = scmp.ne.s32.totalorder (%p1590_p0), %s478_s1, %s920_s19  ;;  %p926_p3 = scmp.lt.s32.totalorder (%p1590_p0), %s920_s19, %s920_s19 }
  0x10   : > { %880 = vperm.xlu1 %878, %v879_v41   ;;  %v131_v48 = vsel %vm129_vm4, 1, %v1210_v34  ;;  %v595_v49 = vsel %vm129_vm4, 1.0, %v1211_v38  ;;  %v596_v50 = vsel %vm130_vm5, 1.0, %v1211_v38  ;;  %v132_v51 = vsel %vm130_vm5, 1, %v1210_v34 }
  0x11   : > { %v889_v52 = vpack.i.bf16 %v596_v50, %v595_v49  ;;  %vm161_vm6 = vcmp.eq.s32.totalorder %v1402_v35, 3  ;;  %vm162_vm7 = vcmp.eq.s32.totalorder %v1404_v36, 3  ;;  %vm193_vm8 = vcmp.eq.s32.totalorder %v1402_v35, 4  ;;  %p927_p4 = por (%p1590_p0), %p926_p3, %p925_p2 }
  0x12   : > { %73 = vperm.xlu0 %877, %v68_v42   ;;  %v163_v53 = vsel %vm161_vm6, 1, %v1210_v34  ;;  %v597_v54 = vsel %vm161_vm6, 1.0, %v1211_v38  ;;  %v598_v55 = vsel %vm162_vm7, 1.0, %v1211_v38  ;;  %v164_v56 = vsel %vm162_vm7, 1, %v1210_v34 }
  0x13   : > { %v894_v57 = vpack.i.bf16 %v598_v55, %v597_v54  ;;  %vm194_vm9 = vcmp.eq.s32.totalorder %v1404_v36, 4  ;;  %v195_v58 = vsel %vm193_vm8, 1, %v1210_v34  ;;  %vm225_vm10 = vcmp.eq.s32.totalorder %v1402_v35, 5  ;;  %p928_p5 = pnand (%p1590_p0), %p927_p4, %p921_p1 }
  0x14   : > { %102 = vperm.xlu1 %878, %v99_v43   ;;  %v196_v59 = vsel %vm194_vm9, 1, %v1210_v34  ;;  %vm226_vm11 = vcmp.eq.s32.totalorder %v1404_v36, 5  ;;  %v227_v60 = vsel %vm225_vm10, 1, %v1210_v34  ;;  %vm257_vm12 = vcmp.eq.s32.totalorder %v1402_v35, 6 }
  0x15   : > { %v228_v61 = vsel %vm226_vm11, 1, %v1210_v34  ;;  %vm258_vm13 = vcmp.eq.s32.totalorder %v1404_v36, 6  ;;  %v259_v62 = vsel %vm257_vm12, 1, %v1210_v34  ;;  %vm289_vm14 = vcmp.eq.s32.totalorder %v1402_v35, 7 }
  0x16   : > { %105 = vperm.xlu0 %877, %v100_v46   ;;  %v260_v63 = vsel %vm258_vm13, 1, %v1210_v34  ;;  %vm290_vm15 = vcmp.eq.s32.totalorder %v1404_v36, 7  ;;  %v599_v0 = vsel %vm193_vm8, 1.0, %v1211_v38  ;;  %v600_v1 = vsel %vm194_vm9, 1.0, %v1211_v38  ;;  %v1487_v36 = vld [vmem:[%s58_s16] sm:$0xff] }
  0x17   : > { %v291_v37 = vsel %vm289_vm14, 1, %v1210_v34  ;;  %v601_v39 = vsel %vm225_vm10, 1.0, %v1211_v38  ;;  %v602_v40 = vsel %vm226_vm11, 1.0, %v1211_v38  ;;  %v292_v41 = vsel %vm290_vm15, 1, %v1210_v34 }
  0x18   : > { %885 = vperm.xlu1 %878, %v884_v47   ;;  %v899_v42 = vpack.i.bf16 %v600_v1, %v599_v0  ;;  %v603_v43 = vsel %vm257_vm12, 1.0, %v1211_v38  ;;  %v604_v44 = vsel %vm258_vm13, 1.0, %v1211_v38  ;;  %v904_v45 = vpack.i.bf16 %v602_v40, %v601_v39 }
  0x19   : > { %v605_v46 = vsel %vm289_vm14, 1.0, %v1211_v38  ;;  %v606_v47 = vsel %vm290_vm15, 1.0, %v1211_v38  ;;  %v909_v34 = vpack.i.bf16 %v604_v44, %v603_v43 }
  0x1a   : > { %134 = vperm.xlu0 %877, %v131_v48   ;;  %v914_v48 = vpack.i.bf16 %v606_v47, %v605_v46 }
  0x1c   : > { %137 = vperm.xlu1 %878, %v132_v51  }
  0x1e   : > { %890 = vperm.xlu0 %877, %v889_v52  }
  0x20   : > { %166 = vperm.xlu1 %878, %v163_v53   ;;  %v1493_v53 = vld [vmem:[%s58_s16 + $0x8] sm:$0xff] }
  0x22   : > { %169 = vperm.xlu0 %877, %v164_v56  }
  0x24   : > { %895 = vperm.xlu1 %878, %v894_v57  }
  0x26   : > { %198 = vperm.xlu0 %877, %v195_v58  }
  0x28   : > { %201 = vperm.xlu1 %878, %v196_v59  }
  0x2a   : > { %230 = vperm.xlu0 %877, %v227_v60  }
  0x2c   : > { %233 = vperm.xlu1 %878, %v228_v61  }
  0x2e   : > { %262 = vperm.xlu0 %877, %v259_v62  }
  0x30   : > { %265 = vperm.xlu1 %878, %v260_v63  }
  0x32   : > { %294 = vperm.xlu0 %877, %v291_v37  }
  0x34   : > { %297 = vperm.xlu1 %878, %v292_v41  }
  0x36   : > { %900 = vperm.xlu0 %877, %v899_v42  }
  0x38   : > { %905 = vperm.xlu1 %878, %v904_v45  }
  0x3a   : > { %910 = vperm.xlu0 %877, %v909_v34  }
  0x3c   : > { %915 = vperm.xlu1 %878, %v914_v48  }
  0x8d   : > { %v71_v49 = vpop.permute.xlu0 %70 }
  0x8e   : > { %vm75_vm0 = vcmp.eq.s32.totalorder %v71_v49, 1 }
  0x8f   : > { %v77_v35 = vsel %vm75_vm0, %v1487_v36, -inf  ;;  %v881_v50 = vpop.permute.xlu1 %880  ;;  %vm375_vm0 = vcmask (%p1590_p0), 1040384  }
  0x90   : > { %v1491_v33 = vmax.f32 %v1202_v33, %v77_v35   ;;  %v883_v51 = vunpack.i.h.bf16 %v881_v50  ;;  %v882_v52 = vunpack.i.l.bf16 %v881_v50 }
  0x91   : > { %v74_v54 = vpop.permute.xlu0 %73 }
  0x92   : > { %1749 = vst [vmem:[#allocation7_spill] sm:$0xff] %v1491_v33  ;;  %v1496_v17 = vmax.f32 %v1138_v17, %v882_v52   ;;  %v1499_v16 = vmax.f32 %v1134_v16, %v883_v51   ;;  %vm76_vm1 = vcmp.eq.s32.totalorder %v74_v54, 1 }
  0x93   : > { %v78_v57 = vsel %vm76_vm1, %v1493_v53, -inf  ;;  %v103_v58 = vpop.permute.xlu1 %102  ;;  %vm377_vm1 = vcmask (%p1590_p0), 1041408  }
  0x94   : > { %v1750_v55 = vmov %v1496_v17  ;;  %v1751_v56 = vmov %v1499_v16  ;;  %v1503_v32 = vmax.f32 %v1198_v32, %v78_v57   ;;  %vm107_vm2 = vcmp.eq.s32.totalorder %v103_v58, 1 }
  0x95   : > { %v109_v33 = vsel %vm107_vm2, %v1487_v36, -inf  ;;  %v106_v60 = vpop.permute.xlu0 %105  ;;  %vm379_vm2 = vcmask (%p1590_p0), 1042432  }
  0x96   : > { %1752 = vst [vmem:[#allocation8_spill] sm:$0xff] %v1503_v32  ;;  %v1507_v31 = vmax.f32 %v1194_v31, %v109_v33   ;;  %vm108_vm3 = vcmp.eq.s32.totalorder %v106_v60, 1 }
  0x97   : > { %v110_v17 = vsel %vm108_vm3, %v1493_v53, -inf  ;;  %v886_v62 = vpop.permute.xlu1 %885  ;;  %vm381_vm3 = vcmask (%p1590_p0), 1043456  }
  0x98   : > { %1753 = vst [vmem:[#allocation9_spill] sm:$0xff] %v1507_v31  ;;  %v1511_v30 = vmax.f32 %v1190_v30, %v110_v17   ;;  %v888_v16 = vunpack.i.h.bf16 %v886_v62  ;;  %v887_v0 = vunpack.i.l.bf16 %v886_v62 }
  0x99   : > { %v135_v1 = vpop.permute.xlu0 %134 }
  0x9a   : > { %v1754_v63 = vmov %v1511_v30  ;;  %v1514_v15 = vmax.f32 %v1130_v15, %v887_v0   ;;  %v1517_v14 = vmax.f32 %v1126_v14, %v888_v16   ;;  %vm139_vm4 = vcmp.eq.s32.totalorder %v135_v1, 1 }
  0x9b   : > { %v141_v32 = vsel %vm139_vm4, %v1487_v36, -inf  ;;  %v138_v31 = vpop.permute.xlu1 %137  ;;  %vm383_vm4 = vcmask (%p1590_p0), 1044480  }
  0x9c   : > { %v1755_v37 = vmov %v1514_v15  ;;  %v1756_v39 = vmov %v1517_v14  ;;  %v1521_v29 = vmax.f32 %v1186_v29, %v141_v32   ;;  %vm140_vm5 = vcmp.eq.s32.totalorder %v138_v31, 1 }
  0x9d   : > { %v142_v41 = vsel %vm140_vm5, %v1493_v53, -inf  ;;  %v891_v30 = vpop.permute.xlu0 %890  ;;  %vm385_vm5 = vcmask (%p1590_p0), 1045504  }
  0x9e   : > { %v1757_v40 = vmov %v1521_v29  ;;  %v1525_v28 = vmax.f32 %v1182_v28, %v142_v41   ;;  %v893_v43 = vunpack.i.h.bf16 %v891_v30  ;;  %v892_v44 = vunpack.i.l.bf16 %v891_v30 }
  0x9f   : > { %v167_v15 = vpop.permute.xlu1 %166 }
  0xa0   : > { %v1758_v42 = vmov %v1525_v28  ;;  %v1528_v13 = vmax.f32 %v1122_v13, %v892_v44   ;;  %v1531_v12 = vmax.f32 %v1118_v12, %v893_v43   ;;  %vm171_vm6 = vcmp.eq.s32.totalorder %v167_v15, 1 }
  0xa1   : > { %v173_v14 = vsel %vm171_vm6, %v1487_v36, -inf  ;;  %v170_v29 = vpop.permute.xlu0 %169  ;;  %vm387_vm6 = vcmask (%p1590_p0), 1046528  }
  0xa2   : > { %v1759_v45 = vmov %v1528_v13  ;;  %v1760_v46 = vmov %v1531_v12  ;;  %v1535_v27 = vmax.f32 %v1178_v27, %v173_v14   ;;  %vm172_vm7 = vcmp.eq.s32.totalorder %v170_v29, 1 }
  0xa3   : > { %v174_v34 = vsel %vm172_vm7, %v1493_v53, -inf  ;;  %v896_v28 = vpop.permute.xlu1 %895 }
  0xa4   : > { %v1761_v47 = vmov %v1535_v27  ;;  %v1539_v26 = vmax.f32 %v1174_v26, %v174_v34   ;;  %v898_v49 = vunpack.i.h.bf16 %v896_v28  ;;  %v897_v35 = vunpack.i.l.bf16 %v896_v28 }
  0xa5   : > { %v199_v13 = vpop.permute.xlu0 %198  ;;  %v1806_v28 = vmov %v1758_v42 }
  0xa6   : > { %v1762_v48 = vmov %v1539_v26  ;;  %v1542_v11 = vmax.f32 %v1114_v11, %v897_v35   ;;  %v1545_v10 = vmax.f32 %v1110_v10, %v898_v49   ;;  %vm203_vm8 = vcmp.eq.s32.totalorder %v199_v13, 1 }
  0xa7   : > { %v205_v12 = vsel %vm203_vm8, %v1487_v36, -inf  ;;  %v202_v27 = vpop.permute.xlu1 %201  ;;  %v1791_v13 = vmov %v1759_v45 }
  0xa8   : > { %v1763_v50 = vmov %v1542_v11  ;;  %v1764_v51 = vmov %v1545_v10  ;;  %v1549_v25 = vmax.f32 %v1170_v25, %v205_v12   ;;  %vm204_vm9 = vcmp.eq.s32.totalorder %v202_v27, 1 }
  0xa9   : > { %v206_v54 = vsel %vm204_vm9, %v1493_v53, -inf  ;;  %v231_v26 = vpop.permute.xlu0 %230  ;;  %v1790_v12 = vmov %v1760_v46  ;;  %v1805_v27 = vmov %v1761_v47 }
  0xaa   : > { %v1765_v52 = vmov %v1549_v25  ;;  %v1553_v24 = vmax.f32 %v1166_v24, %v206_v54   ;;  %vm235_vm10 = vcmp.eq.s32.totalorder %v231_v26, 1  ;;  %v1804_v26 = vmov %v1762_v48 }
  0xab   : > { %v237_v11 = vsel %vm235_vm10, %v1487_v36, -inf  ;;  %v234_v58 = vpop.permute.xlu1 %233 }
  0xac   : > { %v1766_v57 = vmov %v1553_v24  ;;  %v1557_v23 = vmax.f32 %v1162_v23, %v237_v11   ;;  %vm236_vm11 = vcmp.eq.s32.totalorder %v234_v58, 1  ;;  %v1789_v11 = vmov %v1763_v50 }
  0xad   : > { %v238_v10 = vsel %vm236_vm11, %v1493_v53, -inf  ;;  %v263_v33 = vpop.permute.xlu0 %262 }
  0xae   : > { %1767 = vst [vmem:[#allocation10_spill] sm:$0xff] %v1557_v23  ;;  %v1768_v60 = vmov %v1557_v23  ;;  %v1561_v22 = vmax.f32 %v1158_v22, %v238_v10   ;;  %vm267_vm12 = vcmp.eq.s32.totalorder %v263_v33, 1  ;;  %v1788_v10 = vmov %v1764_v51  ;;  %v1811_v33 = vld [vmem:[#allocation7_spill] sm:$0xff] }
  0xaf   : > { %v269_v25 = vsel %vm267_vm12, %v1487_v36, -inf  ;;  %v266_v17 = vpop.permute.xlu1 %265  ;;  %v410_v33 = vmax.f32 (%p1590_p0), %v1763_v50, %v1764_v51 }
  0xb0   : > { %1769 = vst [vmem:[#allocation11_spill] sm:$0xff] %v1561_v22  ;;  %v1770_v62 = vmov %v1561_v22  ;;  %v1565_v21 = vmax.f32 %v1154_v21, %v269_v25   ;;  %vm268_vm13 = vcmp.eq.s32.totalorder %v266_v17, 1  ;;  %v1795_v17 = vmov %v1750_v55 }
  0xb1   : > { %v270_v24 = vsel %vm268_vm13, %v1493_v53, -inf  ;;  %v295_v16 = vpop.permute.xlu0 %294  ;;  %v1803_v25 = vmov %v1765_v52 }
  0xb2   : > { %1771 = vst [vmem:[#allocation12_spill] sm:$0xff] %v1565_v21  ;;  %v1772_v0 = vmov %v1565_v21  ;;  %v1569_v20 = vmax.f32 %v1150_v20, %v270_v24   ;;  %vm299_vm14 = vcmp.eq.s32.totalorder %v295_v16, 1  ;;  %v1794_v16 = vmov %v1751_v56 }
  0xb3   : > { %v301_v23 = vsel %vm299_vm14, %v1487_v36, -inf  ;;  %v298_v32 = vpop.permute.xlu1 %297  ;;  %v1802_v24 = vmov %v1766_v57 }
  0xb4   : > { %1773 = vst [vmem:[#allocation13_spill] sm:$0xff] %v1569_v20  ;;  %v1774_v1 = vmov %v1569_v20  ;;  %v1573_v19 = vmax.f32 %v1146_v19, %v301_v23   ;;  %vm300_vm15 = vcmp.eq.s32.totalorder %v298_v32, 1  ;;  %v1801_v23 = vmov %v1768_v60  ;;  %v1810_v32 = vld [vmem:[#allocation8_spill] sm:$0xff] }
  0xb5   : > { %v302_v22 = vsel %vm300_vm15, %v1493_v53, -inf  ;;  %v901_v31 = vpop.permute.xlu0 %900 }
  0xb6   : > { %1775 = vst [vmem:[#allocation14_spill] sm:$0xff] %v1573_v19  ;;  %v1776_v41 = vmov %v1573_v19  ;;  %v1577_v18 = vmax.f32 %v1142_v18, %v302_v22   ;;  %v903_v21 = vunpack.i.h.bf16 %v901_v31  ;;  %v902_v30 = vunpack.i.l.bf16 %v901_v31  ;;  %v1809_v31 = vld [vmem:[#allocation9_spill] sm:$0xff] }
  0xb7   : > { %v906_v44 = vpop.permute.xlu1 %905  ;;  %v1800_v22 = vmov %v1770_v62 }
  0xb8   : > { %1777 = vst [vmem:[#allocation15_spill] sm:$0xff] %v1577_v18  ;;  %v1778_v43 = vmov %v1577_v18  ;;  %v221_v34 = vmax.f32 %v1106_v9, %v902_v30   ;;  %v222_v49 = vmax.f32 %v1102_v8, %v903_v21   ;;  %v908_v20 = vunpack.i.h.bf16 %v906_v44 }
  0xb9   : > { %v907_v36 = vunpack.i.l.bf16 %v906_v44  ;;  %v911_v15 = vpop.permute.xlu0 %910  ;;  %v1799_v21 = vmov %v1772_v0  ;;  %v1808_v30 = vmov %v1754_v63  ;;  %v1212_v44 = vmov (%p1590_p0), 0  }
  0xba   : > { %v254_v54 = vmax.f32 %v1094_v6, %v908_v20   ;;  %v913_v19 = vunpack.i.h.bf16 %v911_v15  ;;  %v912_v53 = vunpack.i.l.bf16 %v911_v15  ;;  %v1786_v8 = vmov %v222_v49  ;;  %23 = sbr.rel (!%p1590_p0) target bundleno = 9 (0x9), region = 45  ;;  %919 = vset.pattern.permute.xlu0 (%p1590_p0), %v1212_v44 }
  0xbb   : > { %v253_v35 = vmax.f32 %v1098_v7, %v907_v36   ;;  %v916_v14 = vpop.permute.xlu1 %915  ;;  %v1787_v9 = vmov %v221_v34  ;;  %v1793_v15 = vmov %v1755_v37  ;;  %v1798_v20 = vmov %v1774_v1 }
  0xbc   : > { %v285_v58 = vmax.f32 %v1090_v5, %v912_v53   ;;  %v286_v38 = vmax.f32 %v1086_v4, %v913_v19   ;;  %v918_v18 = vunpack.i.h.bf16 %v916_v14  ;;  %v917_v29 = vunpack.i.l.bf16 %v916_v14 }
  0xbd   : > { %v1784_v6 = vmov %v254_v54  ;;  %v1785_v7 = vmov %v253_v35  ;;  %v1792_v14 = vmov %v1756_v39  ;;  %v1797_v19 = vmov %v1776_v41 }
  0xbe   : > { %v317_v59 = vmax.f32 %v1082_v3, %v917_v29   ;;  %v318_v61 = vmax.f32 %v1078_v2, %v918_v18   ;;  %v1782_v4 = vmov %v286_v38  ;;  %v1783_v5 = vmov %v285_v58  ;;  %v1813_v19 = vld [vmem:[#allocation8_spill] sm:$0xff] (%p1590_p0)  ;;  %v1814_v14 = vld [vmem:[#allocation7_spill] sm:$0xff] (%p1590_p0) }
  0xbf   : > { %v1796_v18 = vmov %v1778_v43  ;;  %v1807_v29 = vmov %v1757_v40  ;;  %v389_v36 = vmax.f32 (%p1590_p0), %v1750_v55, %v1751_v56  ;;  %v396_v53 = vmax.f32 (%p1590_p0), %v1755_v37, %v1756_v39 }
  0xc0   : > { %v1780_v2 = vmov %v318_v61  ;;  %v1781_v3 = vmov %v317_v59  ;;  %v403_v41 = vmax.f32 (%p1590_p0), %v1759_v45, %v1760_v46  ;;  %v417_v43 = vmax.f32 (%p1590_p0), %v221_v34, %v222_v49  ;;  %v1815_v18 = vld [vmem:[#allocation9_spill] sm:$0xff] (%p1590_p0) }
  0xc1   :  { %v424_v0 = vmax.f32 %v253_v35, %v254_v54  ;;  %v431_v1 = vmax.f32 %v285_v58, %v286_v38  ;;  %v438_v60 = vmax.f32 %v317_v59, %v318_v61  ;;  %v390_v62 = vrot.slane %v389_v36, 4 }
  0xc2   :  { %v397_v2 = vrot.slane %v396_v53, 4  ;;  %v404_v3 = vrot.slane %v403_v41, 4  ;;  %v411_v4 = vrot.slane %v410_v33, 4  ;;  %v418_v5 = vrot.slane %v417_v43, 4 }
  0xc3   :  { %v425_v6 = vrot.slane %v424_v0, 4  ;;  %v432_v7 = vrot.slane %v431_v1, 4  ;;  %v439_v8 = vrot.slane %v438_v60, 4  ;;  %v391_v9 = vmax.f32 %v389_v36, %v390_v62 }
  0xc4   :  { %v398_v55 = vmax.f32 %v396_v53, %v397_v2  ;;  %v405_v56 = vmax.f32 %v403_v41, %v404_v3  ;;  %v412_v37 = vmax.f32 %v410_v33, %v411_v4  ;;  %v419_v39 = vmax.f32 %v417_v43, %v418_v5  ;;  %v1816_v3 = vld [vmem:[#allocation11_spill] sm:$0xff]  ;;  %v1817_v4 = vld [vmem:[#allocation10_spill] sm:$0xff] }
  0xc5   :  { %v426_v45 = vmax.f32 %v424_v0, %v425_v6  ;;  %v433_v46 = vmax.f32 %v431_v1, %v432_v7  ;;  %v440_v38 = vmax.f32 %v438_v60, %v439_v8  ;;  %v392_v59 = vrot.slane %v391_v9, 2 }
  0xc6   :  { %v399_v61 = vrot.slane %v398_v55, 2  ;;  %v406_v28 = vrot.slane %v405_v56, 2  ;;  %v413_v13 = vrot.slane %v412_v37, 2  ;;  %v420_v50 = vrot.slane %v419_v39, 2 }
  0xc7   :  { %v427_v51 = vrot.slane %v426_v45, 2  ;;  %v434_v12 = vrot.slane %v433_v46, 2  ;;  %v441_v27 = vrot.slane %v440_v38, 2  ;;  %v393_v26 = vmax.f32 %v391_v9, %v392_v59 }
  0xc8   :  { %v400_v11 = vmax.f32 %v398_v55, %v399_v61  ;;  %v407_v10 = vmax.f32 %v405_v56, %v406_v28  ;;  %v414_v62 = vmax.f32 %v412_v37, %v413_v13  ;;  %v421_v25 = vmax.f32 %v419_v39, %v420_v50  ;;  %v455_v37 = vld [vmem:[#allocation3] sm:$0xff] }
  0xc9   :  { %v428_v17 = vmax.f32 %v426_v45, %v427_v51  ;;  %v435_v0 = vmax.f32 %v433_v46, %v434_v12  ;;  %v442_v60 = vmax.f32 %v440_v38, %v441_v27  ;;  %v394_v24 = vrot.slane %v393_v26, 1 }
  0xca   :  { %v401_v16 = vrot.slane %v400_v11, 1  ;;  %v408_v1 = vrot.slane %v407_v10, 1  ;;  %v415_v23 = vrot.slane %v414_v62, 1  ;;  %v422_v32 = vrot.slane %v421_v25, 1 }
  0xcb   :  { %v429_v41 = vrot.slane %v428_v17, 1  ;;  %v436_v22 = vrot.slane %v435_v0, 1  ;;  %v443_v31 = vrot.slane %v442_v60, 1  ;;  %v395_v43 = vmax.f32 %v393_v26, %v394_v24 }
  0xcc   :  { %v402_v21 = vmax.f32 %v400_v11, %v401_v16  ;;  %v409_v30 = vmax.f32 %v407_v10, %v408_v1  ;;  %v416_v34 = vmax.f32 %v414_v62, %v415_v23  ;;  %v423_v49 = vmax.f32 %v421_v25, %v422_v32  ;;  %v1818_v10 = vld [vmem:[#allocation13_spill] sm:$0xff]  ;;  %v1819_v62 = vld [vmem:[#allocation12_spill] sm:$0xff] }
  0xcd   :  { %v430_v20 = vmax.f32 %v428_v17, %v429_v41  ;;  %v437_v15 = vmax.f32 %v435_v0, %v436_v22  ;;  %v444_v35 = vmax.f32 %v442_v60, %v443_v31  ;;  %v319_v58 = vmax.f32 %v1814_v14, %v1813_v19 }
  0xce   :  { %v445_v54 = vsel %vm375_vm0, %v395_v43, %v402_v21  ;;  %v326_v29 = vmax.f32 %v1815_v18, %v1754_v63  ;;  %v333_v36 = vmax.f32 %v1757_v40, %v1758_v42  ;;  %v340_v33 = vmax.f32 %v1761_v47, %v1762_v48 }
  0xcf   :  { %v446_v53 = vsel %vm377_vm1, %v445_v54, %v409_v30  ;;  %v347_v2 = vmax.f32 %v1765_v52, %v1766_v57  ;;  %v354_v5 = vmax.f32 %v1817_v4, %v1816_v3  ;;  %v320_v7 = vrot.slane %v319_v58, 4 }
  0xd0   :  { %v447_v6 = vsel %vm379_vm2, %v446_v53, %v416_v34  ;;  %v327_v8 = vrot.slane %v326_v29, 4  ;;  %v334_v9 = vrot.slane %v333_v36, 4  ;;  %v341_v55 = vrot.slane %v340_v33, 4  ;;  %v1820_v34 = vld [vmem:[#allocation15_spill] sm:$0xff] }
  0xd1   :  { %v448_v63 = vsel %vm381_vm3, %v447_v6, %v423_v49  ;;  %v348_v40 = vrot.slane %v347_v2, 4  ;;  %v355_v42 = vrot.slane %v354_v5, 4  ;;  %v321_v47 = vmax.f32 %v319_v58, %v320_v7  ;;  %v1821_v49 = vld [vmem:[#allocation14_spill] sm:$0xff] }
  0xd2   :  { %v449_v56 = vsel %vm383_vm4, %v448_v63, %v430_v20  ;;  %v328_v48 = vmax.f32 %v326_v29, %v327_v8  ;;  %v335_v39 = vmax.f32 %v333_v36, %v334_v9  ;;  %v342_v57 = vmax.f32 %v340_v33, %v341_v55  ;;  %v452_v63 = vld [vmem:[#allocation2] sm:$0xff] }
  0xd3   :  { %v450_v52 = vsel %vm385_vm5, %v449_v56, %v437_v15  ;;  %v349_v45 = vmax.f32 %v347_v2, %v348_v40  ;;  %v356_v46 = vmax.f32 %v354_v5, %v355_v42  ;;  %v322_v59 = vrot.slane %v321_v47, 2 }
  0xd4   :  { %v451_v38 = vsel %vm387_vm6, %v450_v52, %v444_v35  ;;  %v329_v61 = vrot.slane %v328_v48, 2  ;;  %v336_v28 = vrot.slane %v335_v39, 2  ;;  %v343_v50 = vrot.slane %v342_v57, 2 }
  0xd5   :  { %v456_v13 = vmax.f32 %v455_v37, %v451_v38  ;;  %v350_v51 = vrot.slane %v349_v45, 2  ;;  %v357_v12 = vrot.slane %v356_v46, 2  ;;  %v323_v27 = vmax.f32 %v321_v47, %v322_v59 }
  0xd6   :  { %v330_v26 = vmax.f32 %v328_v48, %v329_v61  ;;  %v337_v11 = vmax.f32 %v335_v39, %v336_v28  ;;  %v361_v25 = vmax.f32 %v1819_v62, %v1818_v10  ;;  %v344_v17 = vmax.f32 %v342_v57, %v343_v50 }
  0xd7   :  { %457 = vst [vmem:[#allocation3] sm:$0xff] %v456_v13  ;;  %vm463_vm7 = vcmp.gt.f32.partialorder %v456_v13, 0.0  ;;  %v351_v0 = vmax.f32 %v349_v45, %v350_v51  ;;  %v358_v60 = vmax.f32 %v356_v46, %v357_v12  ;;  %v324_v16 = vrot.slane %v323_v27, 1 }
  0xd8   :  { %v464_v24 = vsel %vm463_vm7, 1, %v1212_v44  ;;  %v331_v1 = vrot.slane %v330_v26, 1  ;;  %v338_v23 = vrot.slane %v337_v11, 1  ;;  %v345_v32 = vrot.slane %v344_v17, 1 }
  0xd9   :  { %466 = vperm.xlu0 %919, %v464_v24   ;;  %v352_v41 = vrot.slane %v351_v0, 1  ;;  %v359_v22 = vrot.slane %v358_v60, 1  ;;  %v362_v31 = vrot.slane %v361_v25, 4  ;;  %v325_v43 = vmax.f32 %v323_v27, %v324_v16 }
  0xda   :  { %v332_v21 = vmax.f32 %v330_v26, %v331_v1  ;;  %v339_v30 = vmax.f32 %v337_v11, %v338_v23  ;;  %v368_v20 = vmax.f32 %v1821_v49, %v1820_v34  ;;  %v346_v15 = vmax.f32 %v344_v17, %v345_v32 }
  0xdb   :  { %v353_v35 = vmax.f32 %v351_v0, %v352_v41  ;;  %v363_v54 = vmax.f32 %v361_v25, %v362_v31  ;;  %v360_v18 = vmax.f32 %v358_v60, %v359_v22 }
  0xdc   :  { %v369_v19 = vrot.slane %v368_v20, 4  ;;  %v376_v44 = vsel %vm375_vm0, %v325_v43, %v332_v21 }
  0xdd   :  { %v364_v14 = vrot.slane %v363_v54, 2  ;;  %v378_v58 = vsel %vm377_vm1, %v376_v44, %v339_v30 }
  0xde   :  { %v370_v29 = vmax.f32 %v368_v20, %v369_v19  ;;  %v380_v36 = vsel %vm379_vm2, %v378_v58, %v346_v15 }
  0xdf   :  { %v365_v53 = vmax.f32 %v363_v54, %v364_v14  ;;  %v382_v33 = vsel %vm381_vm3, %v380_v36, %v353_v35 }
  0xe0   :  { %v371_v2 = vrot.slane %v370_v29, 2  ;;  %v384_v5 = vsel %vm383_vm4, %v382_v33, %v360_v18 }
  0xe1   :  { %v366_v3 = vrot.slane %v365_v53, 1 }
  0xe2   :  { %v372_v4 = vmax.f32 %v370_v29, %v371_v2 }
  0xe3   :  { %v367_v6 = vmax.f32 %v365_v53, %v366_v3 }
  0xe4   :  { %v373_v7 = vrot.slane %v372_v4, 1 }
  0xe5   :  { %v386_v8 = vsel %vm385_vm5, %v384_v5, %v367_v6 }
  0xe6   :  { %v374_v9 = vmax.f32 %v372_v4, %v373_v7 }
  0xe8   :  { %v388_v55 = vsel %vm387_vm6, %v386_v8, %v374_v9 }
  0xe9   :  { %v453_v40 = vmax.f32 %v452_v63, %v388_v55 }
  0xeb   :  { %454 = vst [vmem:[#allocation2] sm:$0xff] %v453_v40 }
 0x158   :  { %v467_v42 = vpop.permute.xlu0 %466 }
 0x159   :  { %vm468_vm8 = vcmp.eq.s32.totalorder %v467_v42, 1 }
 0x15a   :  { %v469_v56 = vsel %vm468_vm8, %v453_v40, 0.0 }
 0x15b   :  { %470 = vst [vmem:[#allocation4] sm:$0xff] %v469_v56 }
 0x15c   :  { %931 = shalt.err (!%p928_p5)
}
 0x15d   :  { %s932_s22 = scalar_lea.hbm %s1742_s2, 128 }
 0x15e   :  { %p933_p6 = scmp.ne.s32.totalorder %s1742_s2, %s932_s22  ;;  %p936_p7 = scmp.lt.u32.totalorder %s932_s22, %s1742_s2 }
 0x160   :  { %p938_p8 = pnand %p936_p7, %p933_p6 }
 0x162   :  { %941 = shalt.err (!%p938_p8)
}
 0x163   :  { %480 = dma.vmem_to_hbm [thread:$0]  %s478_s1, 128, %s1742_s2, [#allocation5]  }
 0x164   :  { %1074 = dma.done.wait [#allocation5], 128  }
 0x165   :  { %1075 = vsyncadd [#allocation5], 4294967168 }
 0x166   :  { %484 = vsyncpa [#allocation5], 1 }

</bundles_post_ra>
